<compile_context>
chip_gen: v7x
topology: tpu7x:2x2x1
jax: 0.10.0
libtpu: 0.0.40
codegen_flags: <defaults>
</compile_context>

<pallas_src>
import functools
import math

import jax
import jax.numpy as jnp
from jax.experimental import pallas as pl
from jax.experimental.pallas import tpu as pltpu


def _round_up(n, m):
    return ((n + m - 1) // m) * m


# ---------------------------------------------------------------------------
# Pallas kernel: (im2col'd) Conv1d -> ReLU -> max over seq -> Linear head
# ---------------------------------------------------------------------------
def deepr_kernel(x_ref, cw_ref, cb_ref, hw_ref, hb_ref, out_ref, *, tb, tp):
    # Conv1d over the whole batch block == ONE lane-dense MXU matmul
    # (rows = TB*Tp conv windows, contraction = KDp = 128), f32 accumulation.
    h = jnp.dot(x_ref[...], cw_ref[...],
                preferred_element_type=jnp.float32)          # (TB*Tp, Hp) f32
    h = jnp.maximum(h + cb_ref[...], 0.0)                    # bias + ReLU (f32)

    # Per-sequence max-pool: one tile-aligned reshape (Tp % 8 == 0 on the f32
    # result) + a single reduce.  Padded rows replicate a valid window in the
    # wrapper, so the max over Tp equals the max over the T valid positions.
    hp = h.shape[-1]
    pooled = jnp.max(h.reshape(tb, tp, hp), axis=1)          # (TB, Hp) f32

    # Linear head: one (TB, Hp) @ (Hp, Op) matmul, single unmasked lane-dense
    # (TB, Op) store.  pooled is rounded to bf16 exactly like the reference.
    out_ref[...] = (jnp.dot(pooled.astype(hw_ref.dtype), hw_ref[...],
                            preferred_element_type=jnp.float32)
                    + hb_ref[...])


def deepr_conv_head(x, conv_w, conv_b, head_w, head_b):
    """x: [B, L, D] f32; conv_w: [K, D, H]; head_w: [H, O] -> logits [B, O]."""
    B, L, D = x.shape
    K, Dw, H = conv_w.shape
    O = head_w.shape[1]
    assert Dw == D
    assert L >= K, f"sequence length {L} shorter than conv kernel {K}"

    T = L - K + 1                      # valid conv positions per sequence
    KD = K * D
    KDp = _round_up(KD, 128)           # contraction padded to a full MXU pass
    Hp = _round_up(H, 128)             # lane-dense hidden
    Op = _round_up(O, 128)             # lane-dense output
    Tp = _round_up(T, 8)               # sublane-aligned pooling window

    # ---- wrapper-side im2col: keep slices/concats of packed data OUT of the
    # kernel.  The K-fold HBM blow-up is tiny for this stream.
    xc = jnp.concatenate([x[:, k:k + T, :] for k in range(K)], axis=-1)  # (B,T,KD)
    # T-axis pad replicates the last valid conv window -> max-pool unchanged.
    xc = jnp.pad(xc, ((0, 0), (0, Tp - T), (0, 0)), mode="edge")
    # KD-axis zero-pad lines up with the zero-padded weight rows (exact zeros).
    xc = jnp.pad(xc, ((0, 0), (0, 0), (0, KDp - KD)))
    xf = xc.reshape(B * Tp, KDp).astype(jnp.bfloat16)

    # ---- weights: im2col-folded conv weight, everything padded to 128 lanes.
    # Padded rows/cols are zero, so ReLU/max/head see exact zeros there and
    # the extra logit columns (sliced off below) are exactly zero.
    cw = jnp.pad(conv_w.reshape(KD, H),
                 ((0, KDp - KD), (0, Hp - H))).astype(jnp.bfloat16)
    cb = jnp.pad(conv_b.reshape(1, H), ((0, 0), (0, Hp - H))).astype(jnp.float32)
    hw = jnp.pad(head_w, ((0, Hp - H), (0, Op - O))).astype(jnp.bfloat16)
    hb = jnp.pad(head_b.reshape(1, O), ((0, 0), (0, Op - O))).astype(jnp.float32)

    # ---- batch tiling: pick TB as a divisor of B with TB >= 8 (sublane-
    # aligned output block), x block capped at ~2 MiB, preferring >= 4 grid
    # steps (>= 2 per v7x TensorCore so BlockSpec double-buffering has work to
    # overlap on both cores), then >= 2 steps, else the whole batch.
    seq_bytes = Tp * KDp * 2           # bf16 x rows per sequence

    def _pick_tb():
        max_rows = max((2 << 20) // max(seq_bytes, 1), 1)
        for min_steps in (4, 2, 1):
            for cand in range(min(B, max_rows), 7, -1):
                if B % cand == 0 and B // cand >= min_steps:
                    return cand
        return B

    tb = _pick_tb()
    grid = (B // tb,)

    # VMEM per step (double-buffered x/out blocks + resident weights) is only
    # a few hundred KiB -- far under every chip's scoped default (incl. v7x).
    # TODO(synk): for production-length sequences add a second ("arbitrary")
    # grid axis over Tp-chunks with a running (TB, Hp) max accumulator in VMEM
    # scratch, sized against v7x's 64 MiB physical VMEM.
    cost = pl.CostEstimate(
        flops=int(2 * B * Tp * KDp * Hp + 2 * B * Hp * Op),
        transcendentals=0,
        bytes_accessed=int(xf.size * 2 + cw.size * 2 + cb.size * 4
                           + hw.size * 2 + hb.size * 4 + B * Op * 4),
    )

    out = pl.pallas_call(
        functools.partial(deepr_kernel, tb=tb, tp=Tp),
        out_shape=jax.ShapeDtypeStruct((B, Op), jnp.float32),
        grid=grid,
        in_specs=[
            pl.BlockSpec((tb * Tp, KDp), lambda b: (b, 0)),   # im2col'd x block
            pl.BlockSpec((KDp, Hp), lambda b: (0, 0)),        # conv weight
            pl.BlockSpec((1, Hp), lambda b: (0, 0)),          # conv bias
            pl.BlockSpec((Hp, Op), lambda b: (0, 0)),         # head weight
            pl.BlockSpec((1, Op), lambda b: (0, 0)),          # head bias
        ],
        out_specs=pl.BlockSpec((tb, Op), lambda b: (b, 0)),
        compiler_params=pltpu.CompilerParams(
            dimension_semantics=("parallel",)),
        cost_estimate=cost,
    )(xf, cw, cb, hw, hb)
    return out[:, :O]


# ---------------------------------------------------------------------------
# Parameter construction (deterministic, in-script)
# ---------------------------------------------------------------------------
def init_params(key, *, num_nodes, start_embed_dim, hidden_dim, window_size,
                out_dim, n_gap_buckets):
    D, H, O, K = start_embed_dim, hidden_dim, out_dim, 2 * window_size + 1
    k1, k2, k3, k4, k5, k6 = jax.random.split(key, 6)
    node_embed = 0.02 * jax.random.normal(k1, (num_nodes + 1, D), jnp.float32)
    node_embed = node_embed.at[0].set(0.0)            # padding_idx=0
    gap_embed = 0.02 * jax.random.normal(k2, (n_gap_buckets, D), jnp.float32)
    conv_w = (1.0 / math.sqrt(D * K)) * jax.random.normal(
        k3, (K, D, H), jnp.float32)                   # [K, D, H] (torch: [H,D,K])
    conv_b = 0.01 * jax.random.normal(k4, (1, H), jnp.float32)
    head_w = (1.0 / math.sqrt(H)) * jax.random.normal(k5, (H, O), jnp.float32)
    head_b = 0.01 * jax.random.normal(k6, (1, O), jnp.float32)
    return dict(node_embed=node_embed, gap_embed=gap_embed,
                conv_w=conv_w, conv_b=conv_b, head_w=head_w, head_b=head_b)


# ---------------------------------------------------------------------------
# Full forward (glue in JAX, hot path in the Pallas kernel)
# ---------------------------------------------------------------------------
# TODO(synk): TimeGapEmbedding source not provided; using a 4-boundary week
# bucketization (<1w, 1-4w, 4-13w, 13-26w, >=26w) + embedding lookup.
GAP_BOUNDARIES = jnp.array([1.0, 4.0, 13.0, 26.0], jnp.float32)


def deepr_forward(params, node_ids, edge_idx, edge_attr, visit_times,
                  visit_order, attn_mask):
    del edge_idx, edge_attr, visit_order  # unused in the reference forward
    B, V, N = node_ids.shape

    # node embedding gather (== expand full table + torch.gather)
    x = params["node_embed"][node_ids]                       # [B, V, N, D]

    # time-gap embedding + roll first visit row to the end
    buckets = jnp.searchsorted(GAP_BOUNDARIES,
                               visit_times.astype(jnp.float32))
    gap = params["gap_embed"][buckets]                       # [B, V, D]
    gap = jnp.concatenate([gap[:, 1:, :], gap[:, :1, :]], axis=1)
    gap = gap[:, :, None, :]                                 # [B, V, 1, D]

    x = jnp.concatenate([x, gap], axis=-2)                   # [B, V, N+1, D]

    # visit mask: a visit is dropped iff all of its attn_mask entries are True
    visit_mask = ~jnp.all(attn_mask, axis=-1)                # [B, V] bool
    x = x * visit_mask[:, :, None, None].astype(x.dtype)

    # DeeprLayer: flatten visits*(codes+1), conv1d + relu + max; then head
    D = x.shape[-1]
    x = x.reshape(B, V * (N + 1), D)                         # [B, L, D]
    logits = deepr_conv_head(x, params["conv_w"], params["conv_b"],
                             params["head_w"], params["head_b"])
    return {"logits": [logits], "prototypes": None,
            "embeddings": None, "scores": None}


# pure-JAX, bf16-matched reference for the kernel's portion
def _ref_conv_head(x, cw, cb, hw, hb):
    B, L, D = x.shape
    K, _, H = cw.shape
    T = L - K + 1
    xb = x.astype(jnp.bfloat16).astype(jnp.float32)
    cwb = cw.astype(jnp.bfloat16).astype(jnp.float32)
    hwb = hw.astype(jnp.bfloat16).astype(jnp.float32)
    acc = jnp.zeros((B, T, H), jnp.float32)
    for k in range(K):
        acc = acc + jnp.einsum("btd,dh->bth", xb[:, k:k + T, :], cwb[k])
    pooled = jnp.maximum(acc + cb[None], 0.0).max(axis=1)
    pooled = pooled.astype(jnp.bfloat16).astype(jnp.float32)
    return pooled @ hwb + hb


if __name__ == "__main__":
    # small shapes consistent with the module; B=32 so the batch grid gets
    # 4 steps of TB=8 (>= 2 steps per v7x TensorCore -> pipelined DMAs)
    B, V, N = 32, 4, 5             # batch, visits, codes per visit
    num_nodes = 50
    D, H, O = 32, 32, 8            # start_embed_dim, hidden_dim, out_dim
    window_size = 1
    max_weeks_between = 52
    n_gap_buckets = GAP_BOUNDARIES.shape[0] + 1

    params = init_params(jax.random.PRNGKey(0),
                         num_nodes=num_nodes, start_embed_dim=D,
                         hidden_dim=H, window_size=window_size, out_dim=O,
                         n_gap_buckets=n_gap_buckets)

    key = jax.random.PRNGKey(0)
    k_ids, k_t = jax.random.split(key, 2)
    node_ids = jax.random.randint(k_ids, (B, V, N), 0, num_nodes + 1,
                                  dtype=jnp.int32)
    visit_times = jax.random.randint(k_t, (B, V), 0, max_weeks_between + 1,
                                     dtype=jnp.int32)
    visit_order = jnp.tile(jnp.arange(V, dtype=jnp.int32)[None], (B, 1))
    attn_mask = jnp.zeros((B, V, N), bool).at[1, -1, :].set(True)  # pad a visit

    out = deepr_forward(params, node_ids, None, None, visit_times,
                        visit_order, attn_mask)
    logits = jax.block_until_ready(out["logits"][0])
    assert logits.shape == (B, O) and logits.dtype == jnp.float32

    # cross-check the Pallas hot path against a pure-JAX reference
    x = params["node_embed"][node_ids]
    buckets = jnp.searchsorted(GAP_BOUNDARIES, visit_times.astype(jnp.float32))
    gap = params["gap_embed"][buckets]
    gap = jnp.concatenate([gap[:, 1:, :], gap[:, :1, :]], axis=1)[:, :, None, :]
    x = jnp.concatenate([x, gap], axis=-2)
    vm = ~jnp.all(attn_mask, axis=-1)
    x = (x * vm[:, :, None, None].astype(x.dtype)).reshape(B, V * (N + 1), D)
    ref = _ref_conv_head(x, params["conv_w"], params["conv_b"],
                         params["head_w"], params["head_b"])
    assert jnp.allclose(logits, ref, atol=2e-3, rtol=2e-2), \
        float(jnp.max(jnp.abs(logits - ref)))

    print("KERNEL_OK")
</pallas_src>

<mosaic_0001>
module attributes {stable_mosaic.version = 11 : i64} {
  func.func @deepr_kernel(%arg0: i32, %arg1: memref<192x128xbf16, #tpu.memory_space<vmem>>, %arg2: memref<128x128xbf16, #tpu.memory_space<vmem>>, %arg3: memref<1x128xf32, #tpu.memory_space<vmem>>, %arg4: memref<128x128xbf16, #tpu.memory_space<vmem>>, %arg5: memref<1x128xf32, #tpu.memory_space<vmem>>, %arg6: memref<8x128xf32, #tpu.memory_space<vmem>>) attributes {dimension_semantics = [#tpu.dimension_semantics<parallel>], iteration_bounds = array<i64: 4>, scalar_prefetch = 0 : i64, scratch_operands = 0 : i64, tpu.core_type = #tpu.core_type<tc>, window_params = [{transform_indices = @transform_0, window_bounds = array<i64: 192, 128>}, {pipeline_mode = #tpu.pipeline_mode<synchronous>, transform_indices = @transform_1, window_bounds = array<i64: 128, 128>}, {pipeline_mode = #tpu.pipeline_mode<synchronous>, transform_indices = @transform_2, window_bounds = array<i64: 1, 128>}, {pipeline_mode = #tpu.pipeline_mode<synchronous>, transform_indices = @transform_3, window_bounds = array<i64: 128, 128>}, {pipeline_mode = #tpu.pipeline_mode<synchronous>, transform_indices = @transform_4, window_bounds = array<i64: 1, 128>}, {transform_indices = @transform_5, window_bounds = array<i64: 8, 128>}]} {
    %c0 = arith.constant 0 : index
    %c0_0 = arith.constant 0 : index
    %0 = vector.load %arg1[%c0, %c0_0] : memref<192x128xbf16, #tpu.memory_space<vmem>>, vector<192x128xbf16>
    %c0_1 = arith.constant 0 : index
    %c0_2 = arith.constant 0 : index
    %1 = vector.load %arg2[%c0_1, %c0_2] : memref<128x128xbf16, #tpu.memory_space<vmem>>, vector<128x128xbf16>
    %cst = arith.constant dense<0.000000e+00> : vector<192x128xf32>
    %2 = tpu.matmul %0, %1, %cst {dimension_numbers = #tpu.dot_dimension_numbers<[1], [0], [0], [1], [0, 0, 1, 1], [], []>} : vector<192x128xbf16>, vector<128x128xbf16>, vector<192x128xf32> -> vector<192x128xf32>
    %c0_3 = arith.constant 0 : index
    %c0_4 = arith.constant 0 : index
    %3 = vector.load %arg3[%c0_3, %c0_4] : memref<1x128xf32, #tpu.memory_space<vmem>>, vector<1x128xf32>
    %4 = vector.broadcast %3 : vector<1x128xf32> to vector<192x128xf32>
    %5 = arith.addf %2, %4 : vector<192x128xf32>
    %cst_5 = arith.constant 0.000000e+00 : f32
    %6 = vector.broadcast %cst_5 : f32 to vector<192x128xf32>
    %7 = arith.maximumf %5, %6 : vector<192x128xf32>
    %8 = vector.shape_cast %7 : vector<192x128xf32> to vector<8x24x128xf32>
    %cst_6 = arith.constant dense<0xFF800000> : vector<8x128xf32>
    %9 = vector.multi_reduction <maximumf>, %8, %cst_6 [1] : vector<8x24x128xf32> to vector<8x128xf32>
    %10 = arith.truncf %9 : vector<8x128xf32> to vector<8x128xbf16>
    %c0_7 = arith.constant 0 : index
    %c0_8 = arith.constant 0 : index
    %11 = vector.load %arg4[%c0_7, %c0_8] : memref<128x128xbf16, #tpu.memory_space<vmem>>, vector<128x128xbf16>
    %cst_9 = arith.constant dense<0.000000e+00> : vector<8x128xf32>
    %12 = tpu.matmul %10, %11, %cst_9 {dimension_numbers = #tpu.dot_dimension_numbers<[1], [0], [0], [1], [0, 0, 1, 1], [], []>} : vector<8x128xbf16>, vector<128x128xbf16>, vector<8x128xf32> -> vector<8x128xf32>
    %c0_10 = arith.constant 0 : index
    %c0_11 = arith.constant 0 : index
    %13 = vector.load %arg5[%c0_10, %c0_11] : memref<1x128xf32, #tpu.memory_space<vmem>>, vector<1x128xf32>
    %14 = vector.broadcast %13 : vector<1x128xf32> to vector<8x128xf32>
    %15 = arith.addf %12, %14 : vector<8x128xf32>
    %c0_12 = arith.constant 0 : index
    %c0_13 = arith.constant 0 : index
    %16 = vector.load %arg6[%c0_12, %c0_13] : memref<8x128xf32, #tpu.memory_space<vmem>>, vector<8x128xf32>
    tpu.vector_store %arg6[%c0_12, %c0_13], %15 {strides = array<i32>} : memref<8x128xf32, #tpu.memory_space<vmem>>, vector<8x128xf32>,
    return
  }
  func.func @transform_0(%arg0: i32) -> (i32, i32) {
    %c0_i32 = arith.constant 0 : i32
    %c0_i32_0 = arith.constant 0 : i32
    return %arg0, %c0_i32 : i32, i32
  }
  func.func @transform_1(%arg0: i32) -> (i32, i32) {
    %c0_i32 = arith.constant 0 : i32
    %c0_i32_0 = arith.constant 0 : i32
    %c0_i32_1 = arith.constant 0 : i32
    return %c0_i32, %c0_i32_0 : i32, i32
  }
  func.func @transform_2(%arg0: i32) -> (i32, i32) {
    %c0_i32 = arith.constant 0 : i32
    %c0_i32_0 = arith.constant 0 : i32
    %c0_i32_1 = arith.constant 0 : i32
    return %c0_i32, %c0_i32_0 : i32, i32
  }
  func.func @transform_3(%arg0: i32) -> (i32, i32) {
    %c0_i32 = arith.constant 0 : i32
    %c0_i32_0 = arith.constant 0 : i32
    %c0_i32_1 = arith.constant 0 : i32
    return %c0_i32, %c0_i32_0 : i32, i32
  }
  func.func @transform_4(%arg0: i32) -> (i32, i32) {
    %c0_i32 = arith.constant 0 : i32
    %c0_i32_0 = arith.constant 0 : i32
    %c0_i32_1 = arith.constant 0 : i32
    return %c0_i32, %c0_i32_0 : i32, i32
  }
  func.func @transform_5(%arg0: i32) -> (i32, i32) {
    %c0_i32 = arith.constant 0 : i32
    %c0_i32_0 = arith.constant 0 : i32
    return %arg0, %c0_i32 : i32, i32
  }
}

</mosaic_0001>

<bundles_post_ra>
// kernel: tpu_custom_call.1
= control target key start
LH: loop header
LB: loop body
LE: loop exit
PB: predicated region body
PF: predicated region fallthrough
CT: control target
= control target key end

     0   :  { %10 = vsyncpa [#allocation3], 0  ;;  %s1624_s0 = inlined_call_operand.hbm [shape: bf16[768,128], index: 0, kind: input, shape index: {}]   ;;  %s1625_s1 = inlined_call_operand.hbm [shape: bf16[128,128], index: 1, kind: input, shape index: {}]   ;;  %s1626_s2 = inlined_call_operand.vmem [shape: f32[1,128], index: 2, kind: input, shape index: {}]   ;;  %s1627_s3 = inlined_call_operand.hbm [shape: bf16[128,128], index: 3, kind: input, shape index: {}]   ;;  %s1628_s4 = inlined_call_operand.vmem [shape: f32[1,128], index: 4, kind: input, shape index: {}]   ;;  %s1629_s5 = inlined_call_operand.hbm [shape: f32[32,128], index: 5, kind: output, shape index: {}]  }
   0x1   :  { %12 = vsyncpa [#allocation3 + $0x1], 0 }
   0x2   :  { %13 = vsyncpa [#allocation6], 0 }
   0x3   :  { %14 = vsyncpa [#allocation4], 0 }
   0x4   :  { %16 = vsyncpa [#allocation4 + $0x1], 0  ;;  %s1344_s18 = smov 0   ;;  %s1346_s19 = smov 0  }
   0x5   :  { %s1348_s20 = smov 0   ;;  %s1350_s21 = smov 0  }
   0x6 LB: > { %s1365_s22 = sadd.s32 4294967295, %s1304_s21   ;;  %s913_s23 = sadd.s32 4294967294, %s1304_s21   ;;  %s1304_s21 = sphi %s1350_s21, %s1650_s21   ;;  %s1300_s20 = sphi %s1348_s20, %s1649_s20   ;;  %s1296_s19 = sphi %s1346_s19, %s1648_s19   ;;  %s1292_s18 = sphi %s1344_s18, %s1647_s18  }
   0x7   : > { %p42_p0 = scmp.ne.s32.totalorder %s1296_s19, %s1292_s18  ;;  %p1630_p1 = scmp.eq.s32.totalorder %s1365_s22, 0 }
   0x8   : > { %p156_p3 = scmp.eq.s32.totalorder %s913_s23, 3  ;;  %p914_p5 = scmp.ge.s32.totalorder %s1304_s21, 1 }
   0x9   : > { %p1374_p4 = por %p1630_p1, %p42_p0  ;;  %p163_p7 = scmp.lt.s32.totalorder %s1304_s21, 5 }
   0xa   : > { %p1379_p6 = por %p156_p3, %p42_p0  ;;  %s1306_s27 = smov [#allocation5]  }
   0xb   : > { %s1634_s24 = scalar_select %p1374_p4, 1, 0 }
   0xc   : > { %s1635_s25 = scalar_select %p1379_p6, 1, 0 }
   0xd   : > { %p1384_p8 = pnand %p914_p5, %p163_p7  ;;  %s175_s28 = sshll.u32 %s1306_s27, 4  ;;  %s176_s28 = int_to_ptr.vmem [resolvable:$true] %s175_s28 }
   0xe   : > { %s1307_s30 = smov [#allocation7]   ;;  %s1148_s9 = scalar_lea.hbm %s1625_s1, 1024 }
   0xf   : > { %s1636_s26 = scalar_select %p1384_p8, 1, 0 }
  0x10   : > { %p1061_p9 = pneg %p1384_p8  ;;  %s191_s6 = sshll.u32 %s1307_s30, 4  ;;  %s1396_s6 = int_to_ptr.vmem [resolvable:$true] %s191_s6 }
  0x11   : > { %p1149_p11 = scmp.ne.s32.totalorder %s1625_s1, %s1148_s9  ;;  %p1155_p3 = scmp.lt.u32.totalorder %s1148_s9, %s1625_s1 }
  0x12   : > { %p1392_p10 = pnand %p1061_p9, %p1630_p1 }
  0x14   : > { %p1150_p12 = pneg %p1392_p10 }
  0x16   : > { %p1151_p13 = pnand %p1150_p12, %p1149_p11 }
  0x18   : > { %p1152_p0 = pneg %p1151_p13 }
  0x1a   : > { %p1157_p5 = pnand %p1155_p3, %p1152_p0 }
  0x1c   : > { %1160 = shalt.err (!%p1157_p5)
}
  0x1d   : > { %s1161_s14 = scalar_lea.vmem %s176_s28, 1024  ;;  %p1169_p2 = scmp.lt.s32.totalorder %s176_s28, %s176_s28 }
  0x1e   : > { %p1162_p7 = scmp.ne.s32.totalorder %s176_s28, %s1161_s14  ;;  %p1170_p6 = scmp.lt.s32.totalorder %s1161_s14, %s1161_s14 }
  0x20   : > { %p1164_p9 = pnand %p1162_p7, %p1150_p12  ;;  %p1171_p4 = por %p1170_p6, %p1169_p2 }
  0x22   : > { %p1165_p1 = pneg %p1164_p9 }
  0x24   : > { %p1172_p8 = pnand %p1171_p4, %p1165_p1 }
  0x26   : > { %1175 = shalt.err (!%p1172_p8)
}
  0x27   : > { %s1633_s15 = smov 64   ;;  %s1309_s16 = smov 4  }
  0x28   : > { %1064 = dma.hbm_to_vmem [thread:$0]  (!%p1392_p10), %s1625_s1, 1024, %s176_s28, [#allocation6], %s1633_s15, %s1633_s15, %s1309_s16  }
  0x29   : > { %s1176_s7 = scalar_lea.hbm %s1627_s3, 1024 }
  0x2a   : > { %p1177_p1 = scmp.ne.s32.totalorder %s1627_s3, %s1176_s7  ;;  %p1183_p6 = scmp.lt.u32.totalorder %s1176_s7, %s1627_s3 }
  0x2c   : > { %p1179_p2 = pnand %p1177_p1, %p1150_p12 }
  0x2e   : > { %p1180_p4 = pneg %p1179_p2 }
  0x30   : > { %p1185_p8 = pnand %p1183_p6, %p1180_p4 }
  0x32   : > { %1188 = shalt.err (!%p1185_p8)
}
  0x33   : > { %s1189_s28 = scalar_lea.vmem %s1396_s6, 1024  ;;  %p1197_p3 = scmp.lt.s32.totalorder %s1396_s6, %s1396_s6 }
  0x34   : > { %p1190_p11 = scmp.ne.s32.totalorder %s1396_s6, %s1189_s28  ;;  %p1198_p5 = scmp.lt.s32.totalorder %s1189_s28, %s1189_s28 }
  0x36   : > { %p1192_p13 = pnand %p1190_p11, %p1150_p12  ;;  %p1199_p7 = por %p1198_p5, %p1197_p3 }
  0x38   : > { %p1193_p0 = pneg %p1192_p13 }
  0x3a   : > { %p1200_p9 = pnand %p1199_p7, %p1193_p0 }
  0x3c   : > { %1203 = shalt.err (!%p1200_p9)
}
  0x3d   : > { %1067 = dma.hbm_to_vmem [thread:$0]  (!%p1392_p10), %s1627_s3, 1024, %s1396_s6, [#allocation6], %s1633_s15, %s1633_s15, %s1309_s16  }
  0x3e   : > { %s1452_s29 = sadd.s32 1, %s1304_s21   ;;  %s29_s14 = sadd.s32 1, %s1300_s20 }
  0x3f   : > { %s26_s17 = ssub.s32 %s1304_s21, %s1452_s29  ;;  %p36_p12 = scmp.ne.s32.totalorder %s1300_s20, %s1296_s19 }
  0x40   : > { %p27_p1 = scmp.eq.s32.totalorder %s26_s17, 0  ;;  %p37_p2 = scmp.eq.s32.totalorder %s1304_s21, 0 }
  0x41   : > { %p1638_p4 = scmp.eq.s32.totalorder %s1365_s22, 3  ;;  %p1078_p8 = scmp.lt.s32.totalorder %s1304_s21, 4 }
  0x42   : > { %s1468_s27 = scalar_select %p27_p1, %s1300_s20, %s29_s14  }
  0x43   : > { %p1462_p6 = por %p1638_p4, %p36_p12  ;;  %p38_p11 = por %p37_p2, %p36_p12 }
  0x44   : > { %s208_s30 = sand.u32 1, %s1300_s20   ;;  %s957_s6 = smul.u32 1536, %s1304_s21 }
  0x45   : > { %s1047_s7 = smul.u32 96, %s208_s30  ;;  %p1472_p10 = pnand %p1078_p8, %p38_p11 }
  0x46   : > { %s1479_s11 = scalar_lea.hbm %s1624_s0, %s957_s6  ;;  %s1483_s13 = scalar_lea.sflag [#allocation3], %s208_s30 }
  0x47   : > { %s212_s28 = scalar_lea.vmem [#allocation2], %s1047_s7  ;;  %s1204_s14 = scalar_lea.hbm %s1479_s11, 1536 }
  0x48   : > { %s219_s12 = sshll.u32 %s212_s28, 4  ;;  %p1205_p13 = scmp.ne.s32.totalorder %s1479_s11, %s1204_s14  ;;  %s1481_s12 = int_to_ptr.vmem [resolvable:$true] %s219_s12 }
  0x49   : > { %p1206_p0 = pneg %p1472_p10  ;;  %s1209_s9 = scalar_lea.hbm %s1624_s0, 6144 }
  0x4a   : > { %p1210_p7 = scmp.lt.u32.totalorder %s1479_s11, %s1624_s0  ;;  %p1211_p9 = scmp.lt.u32.totalorder %s1209_s9, %s1204_s14 }
  0x4b   : > { %p1207_p3 = pnand %p1206_p0, %p1205_p13  ;;  %p1213_p1 = scmp.lt.u32.totalorder %s1204_s14, %s1479_s11 }
  0x4c   : > { %p1212_p12 = por %p1211_p9, %p1210_p7 }
  0x4d   : > { %p1208_p5 = pneg %p1207_p3 }
  0x4e   : > { %p1214_p2 = por %p1213_p1, %p1212_p12 }
  0x50   : > { %p1215_p4 = pnand %p1214_p2, %p1208_p5 }
  0x52   : > { %1218 = shalt.err (!%p1215_p4)
}
  0x53   : > { %s1219_s30 = scalar_lea.vmem %s1481_s12, 1536  ;;  %s1310_s7 = smov [#allocation2]  }
  0x54   : > { %p1220_p8 = scmp.ne.s32.totalorder %s1481_s12, %s1219_s30  ;;  %s1224_s28 = sshll.u32 %s1310_s7, 4  ;;  %s1225_s28 = int_to_ptr.vmem [resolvable:$false] %s1224_s28 }
  0x55   : > { %s1226_s15 = scalar_lea.vmem %s1225_s28, 3072  ;;  %p1227_p3 = scmp.lt.s32.totalorder %s1481_s12, %s1225_s28 }
  0x56   : > { %p1222_p11 = pnand %p1220_p8, %p1206_p0  ;;  %p1228_p7 = scmp.lt.s32.totalorder %s1226_s15, %s1219_s30 }
  0x58   : > { %p1223_p13 = pneg %p1222_p11  ;;  %p1229_p9 = por %p1228_p7, %p1227_p3 }
  0x5a   : > { %p1230_p12 = pnand %p1229_p9, %p1223_p13 }
  0x5c   : > { %1233 = shalt.err (!%p1230_p12)
}
  0x5d   : > { %s1641_s14 = smov 64   ;;  %p1642_p0 = scmp.ne.s32.totalorder %s1636_s26, 0 }
  0x5e   : > { %1071 = dma.hbm_to_vmem [thread:$0]  (!%p1472_p10), %s1479_s11, 1536, %s1481_s12, %s1483_s13, %s1641_s14, %s1641_s14, %s1309_s16  }
  0x5f   : > { %231 = sbr.rel (%p1642_p0) target bundleno = 649 (0x289), region = 40  ;;  %s1517_s17 = sand.u32 (!%p1642_p0), 1, %s1296_s19  }
  0x60   : > { %s1048_s6 = smul.u32 (!%p1642_p0), 96, %s1517_s17  ;;  %s234_s9 = scalar_lea.sflag (!%p1642_p0), [#allocation3], %s1517_s17 }
  0x61   : > { %p1643_p5 = scmp.ne.s32.totalorder (!%p1642_p0), %s1634_s24, 0 }
  0x62   : > { %s1521_s10 = scalar_lea.vmem (!%p1642_p0), [#allocation2], %s1048_s6 }
  0x66   : > { %1279 = dma.done.wait (%p1643_p5), %s234_s9, 1536  }
  0x67   : > { %1281 = vsyncadd (%p1643_p5), %s234_s9, 4294965760  ;;  %p1644_p10 = scmp.eq.s32.totalorder %s1365_s22, 0 }
  0x69   : > { %1283 = dma.done.wait (%p1644_p10), [#allocation6], 2048   ;;  %p1645_p1 = pmov %p1644_p10 }
  0x6a   : > { %v1120_v0 = vld [vmem:[#allocation5] sm:$0xff]   ;;  %v1121_v1 = vld [vmem:[#allocation5 + $0x8] sm:$0xff]   ;;  %v1122_v2 = vld [vmem:[#allocation5 + $0x10] sm:$0xff]   ;;  %v1311_v21 = vmov 0.0   ;;  %vm1312_vm0 = vmmov 0   ;;  %vm705_vm1 = vcmask 1041409  }
  0x6b   : > { %1285 = vsyncadd (%p1645_p1), [#allocation6], 4294965248  ;;  %987 = vmatprep.subr.bf16.mxu0 %v1120_v0  ;;  %v1123_v3 = vld [vmem:[#allocation5 + $0x18] sm:$0xff]   ;;  %v1128_v4 = vld [vmem:[%s1521_s10] sm:$0xff]   ;;  %1027 = vmatprep.subr.bf16.mxu1 %v1311_v21  ;;  %vm707_vm2 = vcmask 1042434   ;;  %vm709_vm3 = vcmask 1043459  }
  0x6c   : > { %988 = vmatpush3.bf16.msra.mxu0 %v1120_v0  ;;  %1003 = vmatprep.mubr.bf16.mxu0 %v1128_v4  ;;  %v1124_v5 = vld [vmem:[#allocation5 + $0x20] sm:$0xff]   ;;  %v1125_v6 = vld [vmem:[#allocation5 + $0x28] sm:$0xff]   ;;  %v1126_v7 = vld [vmem:[#allocation5 + $0x30] sm:$0xff]   ;;  %vm711_vm4 = vcmask 1044484   ;;  %vm713_vm5 = vcmask 1045509   ;;  %vm715_vm6 = vcmask 1046534  }
  0x6d   : > { %989 = vmatprep.subr.bf16.mxu0 %v1121_v1  ;;  %v1127_v8 = vld [vmem:[#allocation5 + $0x38] sm:$0xff]   ;;  %v1129_v9 = vld [vmem:[%s1521_s10 + $0x8] sm:$0xff]   ;;  %v1130_v10 = vld [vmem:[%s1521_s10 + $0x10] sm:$0xff]   ;;  %1043 = vmatprep.mubr.msk.bf16.mxu1 %vm1312_vm0, %v1311_v21  ;;  %vm717_vm7 = vcmask 1047559   ;;  %s922_s16 = sshll.u32 %s1517_s17, 3  ;;  %s954_s12 = sshll.u32 %s1365_s22, 7 }
  0x6e   : > { %v1131_v11 = vld [vmem:[%s1521_s10 + $0x18] sm:$0xff]   ;;  %v1132_v12 = vld [vmem:[%s1521_s10 + $0x20] sm:$0xff]   ;;  %v1133_v13 = vld [vmem:[%s1521_s10 + $0x28] sm:$0xff]   ;;  %s271_s13 = scalar_lea.vmem [#allocation8], %s922_s16  ;;  %s1581_s15 = scalar_lea.hbm %s1629_s5, %s954_s12 }
  0x6f   : > { %v1134_v14 = vld [vmem:[%s1521_s10 + $0x30] sm:$0xff]   ;;  %v1135_v15 = vld [vmem:[%s1521_s10 + $0x38] sm:$0xff]   ;;  %v1136_v16 = vld [vmem:[%s1521_s10 + $0x40] sm:$0xff]   ;;  %s824_s30 = sshll.u32 %s271_s13, 4  ;;  %s811_s14 = scalar_lea.sflag [#allocation4], %s1517_s17  ;;  %s1583_s30 = int_to_ptr.vmem [resolvable:$true] %s824_s30 }
  0x70   : > { %990 = vmatpush3.bf16.msra.mxu0 %v1121_v1  ;;  %v1137_v17 = vld [vmem:[%s1521_s10 + $0x48] sm:$0xff]   ;;  %v1138_v18 = vld [vmem:[%s1521_s10 + $0x50] sm:$0xff]   ;;  %v1139_v19 = vld [vmem:[%s1521_s10 + $0x58] sm:$0xff]   ;;  %s1234_s22 = scalar_lea.vmem %s1583_s30, 128  ;;  %s1313_s6 = smov [#allocation8]  }
  0x71   : > { %991 = vmatprep.subr.bf16.mxu0 %v1122_v2  ;;  %v1140_v20 = vld [vmem:[#allocation7] sm:$0xff]   ;;  %v1141_v22 = vld [vmem:[#allocation7 + $0x8] sm:$0xff]   ;;  %v1142_v23 = vld [vmem:[#allocation7 + $0x10] sm:$0xff]   ;;  %p1235_p2 = scmp.ne.s32.totalorder %s1583_s30, %s1234_s22  ;;  %s1238_s9 = sshll.u32 %s1313_s6, 4  ;;  %s1239_s9 = int_to_ptr.vmem [resolvable:$false] %s1238_s9 }
  0x72   : > { %1028 = vmatpush3.bf16.msra.mxu1 %v1140_v20  ;;  %v1143_v24 = vld [vmem:[#allocation7 + $0x18] sm:$0xff]   ;;  %v1144_v25 = vld [vmem:[#allocation7 + $0x20] sm:$0xff]   ;;  %v1145_v26 = vld [vmem:[#allocation7 + $0x28] sm:$0xff]   ;;  %s1240_s10 = scalar_lea.vmem %s1239_s9, 256  ;;  %p1241_p11 = scmp.lt.s32.totalorder %s1583_s30, %s1239_s9 }
  0x73   : > { %1029 = vmatprep.subr.bf16.mxu1 %v1311_v21  ;;  %v1146_v27 = vld [vmem:[#allocation7 + $0x30] sm:$0xff]   ;;  %v1147_v28 = vld [vmem:[#allocation7 + $0x38] sm:$0xff]   ;;  %v1546_v29 = vld [vmem:[%s1626_s2] ss:$0 sm:$0xff]  ;;  %p1236_p4 = pnand %p1235_p2, %p1462_p6  ;;  %p1242_p13 = scmp.lt.s32.totalorder %s1240_s10, %s1234_s22 }
  0x74   : > { %992 = vmatpush3.bf16.msra.mxu0 %v1122_v2 }
  0x75   : > { %993 = vmatprep.subr.bf16.mxu0 %v1123_v3  ;;  %p1237_p8 = pneg %p1236_p4  ;;  %p1243_p3 = por %p1242_p13, %p1241_p11 }
  0x76   : > { %1030 = vmatpush3.bf16.msra.mxu1 %v1141_v22 }
  0x77   : > { %1031 = vmatprep.subr.bf16.mxu1 %v1311_v21  ;;  %p1244_p7 = pnand %p1243_p3, %p1237_p8 }
  0x78   : > { %994 = vmatpush3.bf16.msra.mxu0 %v1123_v3 }
  0x79   : > { %995 = vmatprep.subr.bf16.mxu0 %v1124_v5 }
  0x7a   : > { %1032 = vmatpush3.bf16.msra.mxu1 %v1142_v23 }
  0x7b   : > { %1033 = vmatprep.subr.bf16.mxu1 %v1311_v21 }
  0x7c   : > { %996 = vmatpush3.bf16.msra.mxu0 %v1124_v5 }
  0x7d   : > { %997 = vmatprep.subr.bf16.mxu0 %v1125_v6 }
  0x7e   : > { %1034 = vmatpush3.bf16.msra.mxu1 %v1143_v24 }
  0x7f   : > { %1035 = vmatprep.subr.bf16.mxu1 %v1311_v21 }
  0x80   : > { %998 = vmatpush3.bf16.msra.mxu0 %v1125_v6 }
  0x81   : > { %999 = vmatprep.subr.bf16.mxu0 %v1126_v7 }
  0x82   : > { %1036 = vmatpush3.bf16.msra.mxu1 %v1144_v25 }
  0x83   : > { %1037 = vmatprep.subr.bf16.mxu1 %v1311_v21 }
  0x84   : > { %1000 = vmatpush3.bf16.msra.mxu0 %v1126_v7 }
  0x85   : > { %1001 = vmatprep.subr.bf16.mxu0 %v1127_v8 }
  0x86   : > { %1038 = vmatpush3.bf16.msra.mxu1 %v1145_v26 }
  0x87   : > { %1039 = vmatprep.subr.bf16.mxu1 %v1311_v21 }
  0x88   : > { %1002 = vmatpush3.bf16.msra.mxu0 %v1127_v8 }
  0x8a   : > { %1040 = vmatpush3.bf16.msra.mxu1 %v1146_v27 }
  0x8b   : > { %1004 = vmatmul.mubr.bf16.vlgmr.msra.gmra.mrb[0].mxu0 %v1129_v9  ;;  %1041 = vmatprep.subr.bf16.mxu1 %v1311_v21 }
  0x8c   : > { %1007 = vmatprep.mubr.bf16.mxu0 %v1130_v10 }
  0x8e   : > { %1042 = vmatpush3.bf16.msra.mxu1 %v1147_v28 }
  0x93   : > { %1008 = vmatmul.mubr.bf16.gmra.mrb[4].mxu0 %v1131_v11 }
  0x94   : > { %1011 = vmatprep.mubr.bf16.mxu0 %v1132_v12 }
  0x9b   : > { %1012 = vmatmul.mubr.bf16.gmra.mrb[8].mxu0 %v1133_v13 }
  0x9c   : > { %1015 = vmatprep.mubr.bf16.mxu0 %v1134_v14 }
  0xa3   : > { %1016 = vmatmul.mubr.bf16.gmra.mrb[12].mxu0 %v1135_v15 }
  0xa4   : > { %1019 = vmatprep.mubr.bf16.mxu0 %v1136_v16 }
  0xab   : > { %1020 = vmatmul.mubr.bf16.gmra.mrb[16].mxu0 %v1137_v17 }
  0xac   : > { %1023 = vmatprep.mubr.bf16.mxu0 %v1138_v18 }
  0xb3   : > { %1024 = vmatmul.mubr.bf16.gmra.mrb[20].mxu0 %v1139_v19 }
 0x15e   : > { %v1005_v30 = vpop.f32.mrb[0].mxu0 }
 0x15f   : > { %v475_v31 = vpop.f32.mrb[1].mxu0  ;;  %v484_v35 = vadd.f32 %v1005_v30, %v1546_v29 }
 0x160   : > { %v476_v32 = vadd.f32 %v1546_v29, %v475_v31  ;;  %v1006_v33 = vpop.f32.mrb[2].mxu0 }
 0x161   : > { %v478_v34 = vpop.f32.mrb[3].mxu0  ;;  %v572_v39 = vmax.f32 %v484_v35, 0.0  ;;  %v487_v40 = vadd.f32 %v1006_v33, %v1546_v29 }
 0x162   : > { %v479_v36 = vadd.f32 %v1546_v29, %v478_v34  ;;  %v570_v37 = vmax.f32 %v476_v32, 0.0 }
 0x163   : > { %v573_v50 = vmax.f32 %v487_v40, 0.0 }
 0x164   : > { %v571_v38 = vmax.f32 %v479_v36, 0.0 }
 0x166   : > { %v594_v41 = vmax.f32 %v570_v37, %v571_v38  ;;  %v1009_v42 = vpop.f32.mrb[4].mxu0 }
 0x167   : > { %v500_v43 = vadd.f32 %v1009_v42, %v1546_v29  ;;  %v491_v44 = vpop.f32.mrb[5].mxu0 }
 0x168   : > { %v595_v45 = vmax.f32 %v594_v41, %v572_v39  ;;  %v492_v46 = vadd.f32 %v1546_v29, %v491_v44  ;;  %v1010_v47 = vpop.f32.mrb[6].mxu0 }
 0x169   : > { %v503_v48 = vadd.f32 %v1010_v47, %v1546_v29  ;;  %v494_v49 = vpop.f32.mrb[7].mxu0  ;;  %v576_v54 = vmax.f32 %v500_v43, 0.0 }
 0x16a   : > { %v596_v51 = vrot.slane %v595_v45, 4  ;;  %v574_v52 = vmax.f32 %v492_v46, 0.0  ;;  %v495_v53 = vadd.f32 %v1546_v29, %v494_v49 }
 0x16b   : > { %v577_v55 = vmax.f32 %v503_v48, 0.0 }
 0x16c   : > { %v597_v56 = vmax.f32 %v595_v45, %v596_v51  ;;  %v602_v57 = vmax.f32 %v573_v50, %v574_v52  ;;  %v575_v58 = vmax.f32 %v495_v53, 0.0 }
 0x16d   : > { %v610_v59 = vmax.f32 %v576_v54, %v577_v55 }
 0x16e   : > { %v598_v60 = vrot.slane %v597_v56, 2  ;;  %v603_v61 = vmax.f32 %v602_v57, %v575_v58  ;;  %v1013_v62 = vpop.f32.mrb[8].mxu0 }
 0x16f   : > { %v507_v63 = vpop.f32.mrb[9].mxu0  ;;  %v516_v2 = vadd.f32 %v1013_v62, %v1546_v29 }
 0x170   : > { %v599_v0 = vmax.f32 %v597_v56, %v598_v60  ;;  %v604_v1 = vrot.slane %v603_v61, 4  ;;  %v508_v3 = vadd.f32 %v1546_v29, %v507_v63  ;;  %v1014_v4 = vpop.f32.mrb[10].mxu0 }
 0x171   : > { %v519_v5 = vadd.f32 %v1014_v4, %v1546_v29  ;;  %v510_v6 = vpop.f32.mrb[11].mxu0  ;;  %v580_v12 = vmax.f32 %v516_v2, 0.0 }
 0x172   : > { %v600_v7 = vrot.slane %v599_v0, 1  ;;  %v605_v8 = vmax.f32 %v603_v61, %v604_v1  ;;  %v578_v9 = vmax.f32 %v508_v3, 0.0  ;;  %v511_v10 = vadd.f32 %v1546_v29, %v510_v6 }
 0x173   : > { %v581_v18 = vmax.f32 %v519_v5, 0.0 }
 0x174   : > { %v606_v11 = vrot.slane %v605_v8, 2  ;;  %v611_v13 = vmax.f32 %v610_v59, %v578_v9  ;;  %v579_v14 = vmax.f32 %v511_v10, 0.0  ;;  %v601_v15 = vmax.f32 %v599_v0, %v600_v7 }
 0x176   : > { %v607_v16 = vmax.f32 %v605_v8, %v606_v11  ;;  %v612_v17 = vrot.slane %v611_v13, 4  ;;  %v618_v19 = vmax.f32 %v579_v14, %v580_v12  ;;  %v1017_v20 = vpop.f32.mrb[12].mxu0  ;;  %v658_v26 = vpack.c.bf16 %v601_v15, %v601_v15 }
 0x177   : > { %v523_v21 = vpop.f32.mrb[13].mxu0  ;;  %v532_v27 = vadd.f32 %v1017_v20, %v1546_v29 }
 0x178   : > { %v608_v22 = vrot.slane %v607_v16, 1  ;;  %v613_v23 = vmax.f32 %v611_v13, %v612_v17  ;;  %v619_v24 = vmax.f32 %v618_v19, %v581_v18  ;;  %v1018_v25 = vpop.f32.mrb[14].mxu0  ;;  %v524_v28 = vadd.f32 %v1546_v29, %v523_v21 }
 0x179   : > { %v526_v30 = vpop.f32.mrb[15].mxu0  ;;  %v697_v40 = vunpack.c.l.b16 %v658_v26  ;;  %v584_v41 = vmax.f32 %v532_v27, 0.0  ;;  %v535_v47 = vadd.f32 %v1018_v25, %v1546_v29 }
 0x17a   : > { %v609_v31 = vmax.f32 %v607_v16, %v608_v22  ;;  %v614_v32 = vrot.slane %v613_v23, 2  ;;  %v620_v33 = vrot.slane %v619_v24, 4  ;;  %v527_v34 = vadd.f32 %v1546_v29, %v526_v30 }
 0x17b   : > { %v582_v35 = vmax.f32 %v524_v28, 0.0  ;;  %v585_v62 = vmax.f32 %v535_v47, 0.0 }
 0x17c   : > { %v659_v36 = vpack.c.bf16 %v609_v31, %v609_v31  ;;  %v615_v37 = vmax.f32 %v613_v23, %v614_v32  ;;  %v621_v38 = vmax.f32 %v619_v24, %v620_v33  ;;  %v583_v39 = vmax.f32 %v527_v34, 0.0 }
 0x17e   : > { %v698_v42 = vunpack.c.l.b16 %v659_v36  ;;  %v616_v43 = vrot.slane %v615_v37, 1  ;;  %v622_v44 = vrot.slane %v621_v38, 2  ;;  %v626_v45 = vmax.f32 %v582_v35, %v583_v39  ;;  %v1021_v46 = vpop.f32.mrb[16].mxu0 }
 0x17f   : > { %v548_v48 = vadd.f32 %v1021_v46, %v1546_v29  ;;  %v539_v49 = vpop.f32.mrb[17].mxu0 }
 0x180   : > { %v706_v50 = vsel %vm705_vm1, %v698_v42, %v697_v40  ;;  %v617_v51 = vmax.f32 %v615_v37, %v616_v43  ;;  %v623_v52 = vmax.f32 %v621_v38, %v622_v44  ;;  %v627_v53 = vmax.f32 %v626_v45, %v584_v41  ;;  %v1022_v54 = vpop.f32.mrb[18].mxu0 }
 0x181   : > { %v540_v55 = vadd.f32 %v1546_v29, %v539_v49  ;;  %v551_v56 = vadd.f32 %v1022_v54, %v1546_v29  ;;  %v542_v57 = vpop.f32.mrb[19].mxu0  ;;  %v588_v63 = vmax.f32 %v548_v48, 0.0 }
 0x182   : > { %v660_v58 = vpack.c.bf16 %v617_v51, %v617_v51  ;;  %v624_v59 = vrot.slane %v623_v52, 1  ;;  %v628_v60 = vrot.slane %v627_v53, 4  ;;  %v543_v61 = vadd.f32 %v1546_v29, %v542_v57 }
 0x183   : > { %v586_v0 = vmax.f32 %v540_v55, 0.0  ;;  %v589_v1 = vmax.f32 %v551_v56, 0.0 }
 0x184   : > { %v699_v2 = vunpack.c.l.b16 %v660_v58  ;;  %v625_v3 = vmax.f32 %v623_v52, %v624_v59  ;;  %v629_v4 = vmax.f32 %v627_v53, %v628_v60  ;;  %v587_v5 = vmax.f32 %v543_v61, 0.0 }
 0x185   : > { %v634_v6 = vmax.f32 %v585_v62, %v586_v0  ;;  %v642_v7 = vmax.f32 %v588_v63, %v589_v1  ;;  %v944_v63 = vld [vmem:[%s1628_s4] ss:$0 sm:$0xff] }
 0x186   : > { %v708_v8 = vsel %vm707_vm2, %v699_v2, %v706_v50  ;;  %v661_v9 = vpack.c.bf16 %v625_v3, %v625_v3  ;;  %v630_v10 = vrot.slane %v629_v4, 2  ;;  %v1025_v11 = vpop.f32.mrb[20].mxu0 }
 0x187   : > { %v635_v12 = vmax.f32 %v634_v6, %v587_v5  ;;  %v555_v13 = vpop.f32.mrb[21].mxu0  ;;  %v564_v16 = vadd.f32 %v1025_v11, %v1546_v29 }
 0x188   : > { %v700_v14 = vunpack.c.l.b16 %v661_v9  ;;  %v631_v15 = vmax.f32 %v629_v4, %v630_v10  ;;  %v556_v17 = vadd.f32 %v1546_v29, %v555_v13  ;;  %v1026_v18 = vpop.f32.mrb[22].mxu0 }
 0x189   : > { %v636_v19 = vrot.slane %v635_v12, 4  ;;  %v567_v20 = vadd.f32 %v1026_v18, %v1546_v29  ;;  %v558_v21 = vpop.f32.mrb[23].mxu0  ;;  %v592_v28 = vmax.f32 %v564_v16, 0.0 }
 0x18a   : > { %v632_v22 = vrot.slane %v631_v15, 1  ;;  %v590_v23 = vmax.f32 %v556_v17, 0.0  ;;  %v559_v24 = vadd.f32 %v1546_v29, %v558_v21  ;;  %v710_v25 = vsel %vm709_vm3, %v700_v14, %v708_v8 }
 0x18b   : > { %v637_v26 = vmax.f32 %v635_v12, %v636_v19  ;;  %v593_v35 = vmax.f32 %v567_v20, 0.0 }
 0x18c   : > { %v633_v27 = vmax.f32 %v631_v15, %v632_v22  ;;  %v643_v30 = vmax.f32 %v642_v7, %v590_v23  ;;  %v591_v31 = vmax.f32 %v559_v24, 0.0 }
 0x18d   : > { %v638_v32 = vrot.slane %v637_v26, 2 }
 0x18e   : > { %v662_v33 = vpack.c.bf16 %v633_v27, %v633_v27  ;;  %v644_v34 = vrot.slane %v643_v30, 4  ;;  %v650_v36 = vmax.f32 %v591_v31, %v592_v28 }
 0x18f   : > { %v639_v37 = vmax.f32 %v637_v26, %v638_v32 }
 0x190   : > { %v701_v38 = vunpack.c.l.b16 %v662_v33  ;;  %v645_v39 = vmax.f32 %v643_v30, %v644_v34  ;;  %v651_v40 = vmax.f32 %v650_v36, %v593_v35 }
 0x191   : > { %v640_v41 = vrot.slane %v639_v37, 1 }
 0x192   : > { %v646_v42 = vrot.slane %v645_v39, 2  ;;  %v652_v43 = vrot.slane %v651_v40, 4  ;;  %v712_v29 = vsel %vm711_vm4, %v701_v38, %v710_v25 }
 0x193   : > { %v641_v44 = vmax.f32 %v639_v37, %v640_v41 }
 0x194   : > { %v647_v45 = vmax.f32 %v645_v39, %v646_v42  ;;  %v653_v46 = vmax.f32 %v651_v40, %v652_v43 }
 0x195   : > { %v663_v47 = vpack.c.bf16 %v641_v44, %v641_v44 }
 0x196   : > { %v648_v48 = vrot.slane %v647_v45, 1  ;;  %v654_v49 = vrot.slane %v653_v46, 2 }
 0x197   : > { %v702_v50 = vunpack.c.l.b16 %v663_v47 }
 0x198   : > { %v649_v51 = vmax.f32 %v647_v45, %v648_v48  ;;  %v655_v52 = vmax.f32 %v653_v46, %v654_v49 }
 0x199   : > { %v714_v53 = vsel %vm713_vm5, %v702_v50, %v712_v29 }
 0x19a   : > { %v664_v54 = vpack.c.bf16 %v649_v51, %v649_v51  ;;  %v656_v55 = vrot.slane %v655_v52, 1 }
 0x19c   : > { %v703_v56 = vunpack.c.l.b16 %v664_v54  ;;  %v657_v57 = vmax.f32 %v655_v52, %v656_v55 }
 0x19e   : > { %v665_v58 = vpack.c.bf16 %v657_v57, %v657_v57  ;;  %v716_v59 = vsel %vm715_vm6, %v703_v56, %v714_v53 }
 0x1a0   : > { %v704_v60 = vunpack.c.l.b16 %v665_v58 }
 0x1a2   : > { %v718_v61 = vsel %vm717_vm7, %v704_v60, %v716_v59 }
 0x1a3   : > { %v719_v62 = vpack.c.b16 %v718_v61, %v718_v61 }
 0x1a5   : > { %1044 = vmatmul.mubr.bf16.vlgmr.msra.gmra.mrb[0].mxu1 %v719_v62 }
 0x278   : > { %v803_v0 = vpop.f32.mrb[0].mxu1 }
 0x279   : > { %v804_v1 = vadd.f32 %v944_v63, %v803_v0  ;;  %v1045_v2 = vpop.f32.mrb[1].mxu1 }
 0x27a   : > { %v806_v3 = vpop.f32.mrb[2].mxu1 }
 0x27b   : > { %809 = vst [vmem:[%s271_s13] sm:$0xff] %v804_v1  ;;  %v1046_v4 = vpop.f32.mrb[3].mxu1 }
 0x27c   : > { %1247 = shalt.err (!%p1244_p7)
}
 0x27d   : > { %s1248_s17 = scalar_lea.hbm %s1581_s15, 128  ;;  %s1252_s16 = scalar_lea.hbm %s1629_s5, 512 }
 0x27e   : > { %p1249_p9 = scmp.ne.s32.totalorder %s1581_s15, %s1248_s17  ;;  %p1253_p5 = scmp.lt.u32.totalorder %s1581_s15, %s1629_s5 }
 0x27f   : > { %p1254_p10 = scmp.lt.u32.totalorder %s1252_s16, %s1248_s17  ;;  %p1256_p2 = scmp.lt.u32.totalorder %s1248_s17, %s1581_s15 }
 0x280   : > { %p1250_p12 = pnand %p1249_p9, %p1462_p6 }
 0x281   : > { %p1255_p1 = por %p1254_p10, %p1253_p5 }
 0x282   : > { %p1251_p0 = pneg %p1250_p12 }
 0x283   : > { %p1257_p4 = por %p1256_p2, %p1255_p1 }
 0x285   : > { %p1258_p8 = pnand %p1257_p4, %p1251_p0 }
 0x287   : > { %1261 = shalt.err (!%p1258_p8)
}
 0x288   : > { %1059 = dma.vmem_to_hbm [thread:$0]  (%p1462_p6), %s1583_s30, 128, %s1581_s15, %s811_s14  }
 0x289 PF: > { %p1081_p11 = scmp.ge.s32.totalorder %s1304_s21, 2  ;;  %s836_s12 = sand.u32 1, %s1292_s18  }
 0x28a   : > { %p1646_p13 = scmp.ne.s32.totalorder %s1635_s25, 0  ;;  %s837_s13 = scalar_lea.sflag [#allocation4], %s836_s12 }
 0x28c   : > { %p1073_p3 = pnand %p1081_p11, %p1646_p13 }
 0x28e   : > { %1287 = dma.done.wait (!%p1073_p3), %s837_s13, 128  }
 0x28f   : > { %1289 = vsyncadd (!%p1073_p3), %s837_s13, 4294967168  ;;  %p19_p7 = scmp.ge.s32.totalorder %s1452_s29, 6   ;;  %s1647_s18 = smov %s1296_s19 }
 0x290   : > { %s1648_s19 = smov %s1300_s20  ;;  %s1649_s20 = smov %s1468_s27 }
 0x291   : > { %s1650_s21 = smov %s1452_s29  ;;  %21 = sbr.rel (!%p19_p7) target bundleno = 6 (0x6), region = 93 }
 0x298   :  { %842 = vsyncpa [#allocation3], 1 }
 0x299   :  { %844 = vsyncpa [#allocation3 + $0x1], 1 }
 0x29a   :  { %845 = vsyncpa [#allocation6], 1 }
 0x29b   :  { %846 = vsyncpa [#allocation4], 1 }
 0x29c   :  { %848 = vsyncpa [#allocation4 + $0x1], 1 }

</bundles_post_ra>
